<compile_context>
chip_gen: v6e
topology: v6e:2x2x1
jax: 0.10.0
libtpu: 0.0.40
codegen_flags: <defaults>
</compile_context>

<pallas_src>
import functools

import jax
import jax.numpy as jnp
from jax.experimental import pallas as pl
from jax.experimental.pallas import tpu as pltpu


def _round_up(n, m):
    return ((n + m - 1) // m) * m


def _cdiv(a, b):
    return -(-a // b)


def _vmem_budget_bytes():
    """~78% of per-core VMEM (≈100 MiB on v5e/v6e, ≈50 MiB on v7x)."""
    cap = 64 * 1024 * 1024  # conservative fallback (v7x-sized)
    try:
        cap = int(pltpu.get_tpu_info().vmem_capacity_bytes)
    except Exception:
        pass
    return int(cap * 0.78)


def _weight_vmem_bytes(dim, th):
    # W1 + W2 bf16 (double-buffered) + b1 + b2 f32 (double-buffered).
    return 2 * (2 * dim * th * 2) + 2 * th * 4 + 2 * dim * 4


def _row_vmem_bytes(dim, tm, th, x_itemsize):
    # x tile (native dtype) + f32 out tile, both double-buffered, plus the
    # (tm, th) f32 hidden intermediate and its bf16 copy for the second matmul.
    return 2 * tm * dim * x_itemsize + 2 * tm * dim * 4 + tm * th * 6


def _select_hidden_tile(dim, hidden, budget, x_itemsize=4):
    """Prefer fully VMEM-resident weights (th == padded hidden -> one k step)."""
    hid128 = _round_up(hidden, 128)
    cands = [hid128] + [t for t in (2048, 1024, 512, 256, 128) if t < hid128]
    for th in cands:
        if (_weight_vmem_bytes(dim, th)
                + _row_vmem_bytes(dim, 256, th, x_itemsize)) <= budget:
            return th, _round_up(hidden, th)
    th = cands[-1]
    return th, _round_up(hidden, th)


def _select_row_tile(rows, dim, th, num_k, budget, x_itemsize):
    rows8 = _round_up(rows, 8)
    w_bytes = _weight_vmem_bytes(dim, th)
    tm_max = 1024
    while tm_max > 256 and w_bytes + _row_vmem_bytes(dim, tm_max, th, x_itemsize) > budget:
        tm_max //= 2
    n = _cdiv(rows8, tm_max)
    if n == 1 and num_k == 1 and rows8 >= 512:
        # Weights are resident (no re-stream penalty): split rows so both
        # TensorCores get work under megacore sharding (v7x).
        n = 2
    tm = _round_up(_cdiv(rows8, n), 8)
    return tm, n * tm


def _pffn_kernel(num_k, x_ref, w1_ref, b1_ref, w2_ref, b2_ref, o_ref):
    # x_ref : (tm, dim)  native dtype      w1_ref: (dim, th)  bf16
    # b1_ref: (1, th)    f32               w2_ref: (th, dim)  bf16
    # b2_ref: (1, dim)   f32               o_ref : (tm, dim)  f32
    h = jnp.dot(x_ref[...].astype(jnp.bfloat16), w1_ref[...],
                preferred_element_type=jnp.float32)
    h = jnp.maximum(h + b1_ref[...], 0.0)          # bias + ReLU in f32
    # Dropout(dp_rate=0.0, eval) == identity.
    partial = jnp.dot(h.astype(jnp.bfloat16), w2_ref[...],
                      preferred_element_type=jnp.float32)

    if num_k == 1:
        # Weights fully resident: single shot, no accumulation needed.
        o_ref[...] = partial + b2_ref[...]
    else:
        k = pl.program_id(1)

        @pl.when(k == 0)
        def _():
            o_ref[...] = partial

        @pl.when(jnp.logical_and(k > 0, k < num_k - 1))
        def _():
            o_ref[...] += partial

        @pl.when(k == num_k - 1)
        def _():
            o_ref[...] = o_ref[...] + partial + b2_ref[...]


@functools.partial(jax.jit, static_argnames=("th", "budget"))
def _pffn_forward(x, w1p, b1p, w2p, b2p, *, th, budget):
    orig_shape = x.shape
    dim = orig_shape[-1]
    rows = 1
    for s in orig_shape[:-1]:
        rows *= s
    hid_p = w1p.shape[1]
    num_k = hid_p // th
    x_itemsize = jnp.dtype(x.dtype).itemsize

    tm, rows_p = _select_row_tile(rows, dim, th, num_k, budget, x_itemsize)
    num_row_tiles = rows_p // tm

    x2d = x.reshape(rows, dim)
    if rows_p != rows:
        x2d = jnp.pad(x2d, ((0, rows_p - rows), (0, 0)))

    grid = (num_row_tiles, num_k)

    flops = 4 * rows_p * dim * hid_p  # two matmuls, each 2*M*K*N
    w_bytes = (w1p.size + w2p.size) * 2 + (b1p.size + b2p.size) * 4
    bytes_accessed = (rows_p * dim * x_itemsize
                      + w_bytes * (1 if num_k == 1 else num_row_tiles)
                      + rows_p * dim * 4)

    out2d = pl.pallas_call(
        functools.partial(_pffn_kernel, num_k),
        out_shape=jax.ShapeDtypeStruct((rows_p, dim), jnp.float32),
        grid_spec=pltpu.PrefetchScalarGridSpec(
            num_scalar_prefetch=0,
            grid=grid,
            in_specs=[
                pl.BlockSpec((tm, dim), lambda i, k: (i, 0)),   # x row tile
                pl.BlockSpec((dim, th), lambda i, k: (0, k)),   # W1 hidden chunk
                pl.BlockSpec((1, th), lambda i, k: (0, k)),     # b1 hidden chunk
                pl.BlockSpec((th, dim), lambda i, k: (k, 0)),   # W2 hidden chunk
                pl.BlockSpec((1, dim), lambda i, k: (0, 0)),    # b2 (full)
            ],
            out_specs=pl.BlockSpec((tm, dim), lambda i, k: (i, 0)),
        ),
        compiler_params=pltpu.CompilerParams(
            dimension_semantics=("parallel", "arbitrary"),
            vmem_limit_bytes=budget,
        ),
        cost_estimate=pl.CostEstimate(
            flops=flops, transcendentals=0, bytes_accessed=bytes_accessed),
    )(x2d, w1p, b1p, w2p, b2p)

    out = out2d[:rows].reshape(orig_shape)
    if out.dtype != x.dtype:
        # Non-f32 activations: kernel accumulates/writes f32, cast back here.
        out = out.astype(x.dtype)
    return out


def make_pffn(w1, b1, w2, b2, *, vmem_budget_bytes=None):
    """One-time weight prep (hidden pad + bf16 cast) and tile selection.

    Returns forward(x); the pad/cast pass over the weights runs once here,
    not on every forward call.
    """
    dim, hidden = w1.shape
    budget = int(vmem_budget_bytes) if vmem_budget_bytes else _vmem_budget_bytes()
    th, hid_p = _select_hidden_tile(dim, hidden, budget)

    w1p = jnp.pad(w1, ((0, 0), (0, hid_p - hidden))).astype(jnp.bfloat16)
    b1p = jnp.pad(b1.reshape(1, hidden),
                  ((0, 0), (0, hid_p - hidden))).astype(jnp.float32)
    w2p = jnp.pad(w2, ((0, hid_p - hidden), (0, 0))).astype(jnp.bfloat16)
    b2p = b2.reshape(1, dim).astype(jnp.float32)
    w1p, b1p, w2p, b2p = jax.block_until_ready((w1p, b1p, w2p, b2p))

    def forward(x):
        return _pffn_forward(x, w1p, b1p, w2p, b2p, th=th, budget=budget)

    return forward


def init_pffn_params(key, dim, hidden_dim, dtype=jnp.float32):
    """Deterministic synthetic init (shapes match nn.Linear(dim,hidden)/(hidden,dim))."""
    k1, k2, k3, k4 = jax.random.split(key, 4)
    s1 = 1.0 / (dim ** 0.5)
    s2 = 1.0 / (hidden_dim ** 0.5)
    w1 = jax.random.uniform(k1, (dim, hidden_dim), dtype, -s1, s1)
    b1 = jax.random.uniform(k2, (hidden_dim,), dtype, -s1, s1)
    w2 = jax.random.uniform(k3, (hidden_dim, dim), dtype, -s2, s2)
    b2 = jax.random.uniform(k4, (dim,), dtype, -s2, s2)
    return w1, b1, w2, b2


if __name__ == "__main__":
    # Small shapes consistent with the module: batch=2, seq=8, dim=32, hidden=64.
    B, S, dim, hidden = 2, 8, 32, 64
    key = jax.random.PRNGKey(0)
    kx, kp = jax.random.split(key)

    x = jax.random.normal(kx, (B, S, dim), jnp.float32)
    w1, b1, w2, b2 = init_pffn_params(kp, dim, hidden)

    pffn = make_pffn(w1, b1, w2, b2)
    out = jax.block_until_ready(pffn(x))

    # Pure-JAX f32 reference of the exact forward semantics (kernel uses bf16 MXU
    # operands with f32 accumulation -> loose tolerance).
    ref = jnp.maximum(x @ w1 + b1, 0.0) @ w2 + b2
    assert out.shape == (B, S, dim)
    err = float(jnp.max(jnp.abs(out - ref)))
    assert jnp.allclose(out, ref, atol=3e-2, rtol=3e-2), err

    print("KERNEL_OK")
</pallas_src>

<mosaic_0001>
module attributes {stable_mosaic.version = 11 : i64} {
  func.func @_pffn_kernel(%arg0: i32, %arg1: i32, %arg2: memref<16x32xf32, #tpu.memory_space<vmem>>, %arg3: memref<32x128xbf16, #tpu.memory_space<vmem>>, %arg4: memref<1x128xf32, #tpu.memory_space<vmem>>, %arg5: memref<128x32xbf16, #tpu.memory_space<vmem>>, %arg6: memref<1x32xf32, #tpu.memory_space<vmem>>, %arg7: memref<16x32xf32, #tpu.memory_space<vmem>>) attributes {dimension_semantics = [#tpu.dimension_semantics<parallel>, #tpu.dimension_semantics<arbitrary>], iteration_bounds = array<i64: 1, 1>, scalar_prefetch = 0 : i64, scratch_operands = 0 : i64, tpu.core_type = #tpu.core_type<tc>, window_params = [{transform_indices = @transform_0, window_bounds = array<i64: 16, 32>}, {transform_indices = @transform_1, window_bounds = array<i64: 32, 128>}, {transform_indices = @transform_2, window_bounds = array<i64: 1, 128>}, {transform_indices = @transform_3, window_bounds = array<i64: 128, 32>}, {pipeline_mode = #tpu.pipeline_mode<synchronous>, transform_indices = @transform_4, window_bounds = array<i64: 1, 32>}, {transform_indices = @transform_5, window_bounds = array<i64: 16, 32>}]} {
    %c0 = arith.constant 0 : index
    %c0_0 = arith.constant 0 : index
    %0 = vector.load %arg2[%c0, %c0_0] : memref<16x32xf32, #tpu.memory_space<vmem>>, vector<16x32xf32>
    %1 = arith.truncf %0 : vector<16x32xf32> to vector<16x32xbf16>
    %c0_1 = arith.constant 0 : index
    %c0_2 = arith.constant 0 : index
    %2 = vector.load %arg3[%c0_1, %c0_2] : memref<32x128xbf16, #tpu.memory_space<vmem>>, vector<32x128xbf16>
    %cst = arith.constant dense<0.000000e+00> : vector<16x128xf32>
    %3 = tpu.matmul %1, %2, %cst {dimension_numbers = #tpu.dot_dimension_numbers<[1], [0], [0], [1], [0, 0, 1, 1], [], []>} : vector<16x32xbf16>, vector<32x128xbf16>, vector<16x128xf32> -> vector<16x128xf32>
    %c0_3 = arith.constant 0 : index
    %c0_4 = arith.constant 0 : index
    %4 = vector.load %arg4[%c0_3, %c0_4] : memref<1x128xf32, #tpu.memory_space<vmem>>, vector<1x128xf32>
    %5 = vector.broadcast %4 : vector<1x128xf32> to vector<16x128xf32>
    %6 = arith.addf %3, %5 : vector<16x128xf32>
    %cst_5 = arith.constant 0.000000e+00 : f32
    %7 = vector.broadcast %cst_5 : f32 to vector<16x128xf32>
    %8 = arith.maximumf %6, %7 : vector<16x128xf32>
    %9 = arith.truncf %8 : vector<16x128xf32> to vector<16x128xbf16>
    %c0_6 = arith.constant 0 : index
    %c0_7 = arith.constant 0 : index
    %10 = vector.load %arg5[%c0_6, %c0_7] : memref<128x32xbf16, #tpu.memory_space<vmem>>, vector<128x32xbf16>
    %cst_8 = arith.constant dense<0.000000e+00> : vector<16x32xf32>
    %11 = tpu.matmul %9, %10, %cst_8 {dimension_numbers = #tpu.dot_dimension_numbers<[1], [0], [0], [1], [0, 0, 1, 1], [], []>} : vector<16x128xbf16>, vector<128x32xbf16>, vector<16x32xf32> -> vector<16x32xf32>
    %c0_9 = arith.constant 0 : index
    %c0_10 = arith.constant 0 : index
    %12 = vector.load %arg6[%c0_9, %c0_10] : memref<1x32xf32, #tpu.memory_space<vmem>>, vector<1x32xf32>
    %13 = vector.broadcast %12 : vector<1x32xf32> to vector<16x32xf32>
    %14 = arith.addf %11, %13 : vector<16x32xf32>
    %c0_11 = arith.constant 0 : index
    %c0_12 = arith.constant 0 : index
    %15 = vector.load %arg7[%c0_11, %c0_12] : memref<16x32xf32, #tpu.memory_space<vmem>>, vector<16x32xf32>
    tpu.vector_store %arg7[%c0_11, %c0_12], %14 {strides = array<i32>} : memref<16x32xf32, #tpu.memory_space<vmem>>, vector<16x32xf32>,
    return
  }
  func.func @transform_0(%arg0: i32, %arg1: i32) -> (i32, i32) {
    %c0_i32 = arith.constant 0 : i32
    %c0_i32_0 = arith.constant 0 : i32
    return %arg0, %c0_i32 : i32, i32
  }
  func.func @transform_1(%arg0: i32, %arg1: i32) -> (i32, i32) {
    %c0_i32 = arith.constant 0 : i32
    %c0_i32_0 = arith.constant 0 : i32
    return %c0_i32, %arg1 : i32, i32
  }
  func.func @transform_2(%arg0: i32, %arg1: i32) -> (i32, i32) {
    %c0_i32 = arith.constant 0 : i32
    %c0_i32_0 = arith.constant 0 : i32
    return %c0_i32, %arg1 : i32, i32
  }
  func.func @transform_3(%arg0: i32, %arg1: i32) -> (i32, i32) {
    %c0_i32 = arith.constant 0 : i32
    %c0_i32_0 = arith.constant 0 : i32
    return %arg1, %c0_i32 : i32, i32
  }
  func.func @transform_4(%arg0: i32, %arg1: i32) -> (i32, i32) {
    %c0_i32 = arith.constant 0 : i32
    %c0_i32_0 = arith.constant 0 : i32
    %c0_i32_1 = arith.constant 0 : i32
    return %c0_i32, %c0_i32_0 : i32, i32
  }
  func.func @transform_5(%arg0: i32, %arg1: i32) -> (i32, i32) {
    %c0_i32 = arith.constant 0 : i32
    %c0_i32_0 = arith.constant 0 : i32
    return %arg0, %c0_i32 : i32, i32
  }
}

</mosaic_0001>

<bundles_post_ra>
// kernel: _pffn_forward.1
= control target key start
LH: loop header
LB: loop body
LE: loop exit
PB: predicated region body
PF: predicated region fallthrough
CT: control target
= control target key end

     0   :  { %v316_v1 = vmov 0.0   ;;  %vm317_vm0 = vmmov 0   ;;  %vm48_vm1 = vcmask 261120   ;;  %s399_s0 = inlined_call_operand.vmem [shape: f32[16,32], index: 0, kind: input, shape index: {}]   ;;  %s400_s1 = inlined_call_operand.vmem [shape: bf16[32,128], index: 1, kind: input, shape index: {}]   ;;  %s401_s2 = inlined_call_operand.vmem [shape: f32[1,128], index: 2, kind: input, shape index: {}]   ;;  %s402_s3 = inlined_call_operand.vmem [shape: bf16[128,32], index: 3, kind: input, shape index: {}]   ;;  %s403_s4 = inlined_call_operand.vmem [shape: f32[1,32], index: 4, kind: input, shape index: {}]   ;;  %s404_s5 = inlined_call_operand.hbm [shape: f32[16,32], index: 5, kind: output, shape index: {}]  }
   0x1   :  { %v284_v0 = vld [vmem:[%s400_s1 + $0x8] sm:$0xff]   ;;  %251 = vmatprep.subr.bf16.mxu0 %v316_v1  ;;  %v285_v2 = vld [vmem:[%s400_s1] sm:$0xff]   ;;  %259 = vmatprep.subr.bf16.mxu1 %v316_v1  ;;  %v286_v5 = vld [vmem:[%s402_s3 + $0x38] sm:$0xff]  }
   0x2   :  { %252 = vmatpush3.bf16.msra.mxu0 %v284_v0  ;;  %255 = vmatprep.mubr.msk.bf16.mxu0 %vm317_vm0, %v316_v1  ;;  %v22_v3 = vld [vmem:[%s399_s0] sm:$0xff]  ;;  %v23_v4 = vld [vmem:[%s399_s0 + $0x8] sm:$0xff]  ;;  %v287_v7 = vld [vmem:[%s402_s3 + $0x30] sm:$0xff]  }
   0x3   :  { %253 = vmatprep.subr.bf16.mxu0 %v316_v1  ;;  %275 = vmatprep.mubr.msk.bf16.mxu1 %vm317_vm0, %v316_v1  ;;  %v24_v6 = vpack.c.bf16 %v23_v4, %v22_v3  ;;  %v288_v8 = vld [vmem:[%s402_s3 + $0x28] sm:$0xff]  }
   0x4   :  { %260 = vmatpush3.bf16.msra.mxu1 %v286_v5 }
   0x5   :  { %261 = vmatprep.subr.bf16.mxu1 %v316_v1 }
   0x6   :  { %254 = vmatpush3.bf16.msra.mxu0 %v285_v2 }
   0x8   :  { %262 = vmatpush3.bf16.msra.mxu1 %v287_v7 }
   0x9   :  { %256 = vmatmul.mubr.msk.bf16.vlgmr.msra.gmra.mxu0 %vm48_vm1, %v24_v6  ;;  %263 = vmatprep.subr.bf16.mxu1 %v316_v1 }
   0xa   :  { %10 = vsyncpa [#allocation3], 0  ;;  %v289_v9 = vld [vmem:[%s402_s3 + $0x20] sm:$0xff]   ;;  %v290_v10 = vld [vmem:[%s402_s3 + $0x18] sm:$0xff]  }
   0xb   :  { %v291_v11 = vld [vmem:[%s402_s3 + $0x10] sm:$0xff]   ;;  %v292_v12 = vld [vmem:[%s402_s3 + $0x8] sm:$0xff]   ;;  %v293_v13 = vld [vmem:[%s402_s3] sm:$0xff]   ;;  %s318_s3 = smov [#allocation2]  }
   0xc   :  { %264 = vmatpush3.bf16.msra.mxu1 %v288_v8  ;;  %v226_v14 = vld [vmem:[%s401_s2] ss:$0 sm:$0xff]  ;;  %s215_s19 = sshll.u32 %s318_s3, 4  ;;  %s216_s19 = int_to_ptr.vmem [resolvable:$true] %s215_s19 }
   0xd   :  { %265 = vmatprep.subr.bf16.mxu1 %v316_v1  ;;  %v230_v24 = vld [vmem:[%s403_s4] ss:$0 sm:$0xff]  ;;  %s294_s2 = scalar_lea.vmem %s216_s19, 256  ;;  %p299_p1 = scmp.lt.s32.totalorder %s216_s19, %s216_s19 }
   0xe   :  { %p295_p0 = scmp.ne.s32.totalorder %s216_s19, %s294_s2  ;;  %p300_p2 = scmp.lt.s32.totalorder %s294_s2, %s294_s2 }
  0x10   :  { %266 = vmatpush3.bf16.msra.mxu1 %v289_v9  ;;  %p301_p3 = por %p300_p2, %p299_p1 }
  0x11   :  { %267 = vmatprep.subr.bf16.mxu1 %v316_v1 }
  0x12   :  { %p302_p4 = pnand %p301_p3, %p295_p0 }
  0x14   :  { %268 = vmatpush3.bf16.msra.mxu1 %v290_v10 }
  0x15   :  { %269 = vmatprep.subr.bf16.mxu1 %v316_v1 }
  0x18   :  { %270 = vmatpush3.bf16.msra.mxu1 %v291_v11 }
  0x19   :  { %271 = vmatprep.subr.bf16.mxu1 %v316_v1 }
  0x1c   :  { %272 = vmatpush3.bf16.msra.mxu1 %v292_v12 }
  0x1d   :  { %273 = vmatprep.subr.bf16.mxu1 %v316_v1 }
  0x20   :  { %274 = vmatpush3.bf16.msra.mxu1 %v293_v13 }
  0xc9   :  { %v86_v15 = vpop.f32.mrf.mxu0 }
  0xca   :  { %v87_v17 = vadd.f32 %v226_v14, %v86_v15 }
  0xcb   :  { %v257_v16 = vpop.f32.mrf.mxu0 }
  0xcc   :  { %v93_v21 = vmax.f32 %v87_v17, 0.0 }
  0xcd   :  { %v89_v18 = vpop.f32.mrf.mxu0 }
  0xce   :  { %v90_v19 = vadd.f32 %v226_v14, %v89_v18 }
  0xcf   :  { %v258_v20 = vpop.f32.mrf.mxu0 }
  0xd0   :  { %v94_v22 = vmax.f32 %v90_v19, 0.0 }
  0xd2   :  { %v95_v23 = vpack.c.bf16 %v94_v22, %v93_v21 }
  0xd4   :  { %276 = vmatmul.mubr.bf16.vlgmr.msra.gmra.mxu1 %v95_v23 }
 0x194   :  { %v201_v25 = vpop.f32.mrf.mxu1 }
 0x195   :  { %v202_v26 = vadd.f32 %v230_v24, %v201_v25 }
 0x196   :  { %v277_v27 = vpop.f32.mrf.mxu1 }
 0x197   :  { %208 = vst.msk [vmem:[#allocation2] sm:$0xff] %vm48_vm1, %v202_v26 }
 0x198   :  { %v204_v28 = vpop.f32.mrf.mxu1 }
 0x199   :  { %v205_v29 = vadd.f32 %v230_v24, %v204_v28 }
 0x19a   :  { %v278_v30 = vpop.f32.mrf.mxu1 }
 0x19b   :  { %209 = vst.msk [vmem:[#allocation2 + $0x8] sm:$0xff] %vm48_vm1, %v205_v29 }
 0x19c   :  { %305 = shalt.err (!%p302_p4)
}
 0x19d   :  { %s319_s4 = smov 128   ;;  %s320_s20 = smov 8  }
 0x19e   :  { %221 = dma.vmem_to_hbm [thread:$0]  %s216_s19, 256, %s404_s5, [#allocation3], %s319_s4, %s319_s4, %s320_s20  }
 0x19f   :  { %314 = dma.done.wait [#allocation3], 256  }
 0x1a0   :  { %315 = vsyncadd [#allocation3], 4294967040 }
 0x1a1   :  { %225 = vsyncpa [#allocation3], 1 }

</bundles_post_ra>
